<compile_context>
chip_gen: v6e
topology: v6e:2x2x1
jax: 0.10.0
libtpu: 0.0.40
codegen_flags: <defaults>
</compile_context>

<pallas_src>
import jax
import jax.numpy as jnp
from jax.experimental import pallas as pl
from jax.experimental.pallas import tpu as pltpu


# ----------------------------------------------------------------------------
# Kernel: K-tiled matmul with f32 accumulation, fused bias + log_softmax
# ----------------------------------------------------------------------------
def _projection_kernel(x_ref, w_ref, b_ref, o_ref, acc_ref):
    # x_ref: (TB, TK); w_ref: (TK, N_pad); b_ref: (1, N_pad)
    # o_ref: (TB, N_pad); acc_ref: (TB, N_pad) f32 scratch
    k = pl.program_id(1)

    @pl.when(k == 0)
    def _init():
        acc_ref[...] = jnp.zeros_like(acc_ref)

    acc_ref[...] += jnp.dot(x_ref[...], w_ref[...],
                            preferred_element_type=jnp.float32)

    @pl.when(k == pl.num_programs(1) - 1)
    def _epilogue():
        # Bias stays f32; padded class columns carry -1e30 so they never win
        # the max nor contribute to the log-sum-exp.
        logits = acc_ref[...] + b_ref[...]
        m = jnp.max(logits, axis=-1, keepdims=True)
        shifted = logits - m
        lse = jnp.log(jnp.sum(jnp.exp(shifted), axis=-1, keepdims=True))
        o_ref[...] = (shifted - lse).astype(o_ref.dtype)


# ----------------------------------------------------------------------------
# One-time parameter re-layout (amortized: call once per weight update, cache)
# ----------------------------------------------------------------------------
def precompute_projection_params(weight, bias, n_channels, seq_len,
                                 *, param_dtype=jnp.float32):
    """Builds (w_big, b_pad) for the folded mean+Linear contraction.

    weight: (N, C*W) nn.Linear weight; bias: (N,); seq_len = L (the reduced
    dim).  The flattened (un-transposed) input feature index f = c*L*W+l*W+w
    maps to weight[n, c*W+w] / L.  This materializes an L-inflated weight, so
    it must NOT sit on the per-call path -- cache the result.
    """
    N, CW = weight.shape
    C, L = n_channels, seq_len
    W = CW // C
    K = C * L * W
    N_pad = ((N + 127) // 128) * 128

    w_t = (weight.T.astype(jnp.float32) / jnp.float32(L)).reshape(C, 1, W, N)
    w_big = jnp.broadcast_to(w_t, (C, L, W, N)).reshape(K, N)
    w_big = jnp.pad(w_big, ((0, 0), (0, N_pad - N))).astype(param_dtype)

    # Padded bias columns get a huge negative (kept in f32 -- never cast to
    # bf16, where -1e30 would become -inf and risk inf-inf NaNs).
    b_pad = jnp.pad(bias.reshape(1, N).astype(jnp.float32),
                    ((0, 0), (0, N_pad - N)), constant_values=-1e30)
    return w_big, b_pad


# ----------------------------------------------------------------------------
# Tile selection: K- and VMEM-budget-aware, generation-portable
# ----------------------------------------------------------------------------
_VMEM_BUDGET = 24 << 20  # fits v7x's 32 MiB scoped default; fine on v5e/v6e


def _choose_tiles(B, K, N_pad, x_itemsize):
    # --- K tile: monolithic unless the resident weight block gets large ----
    if 2 * K * N_pad * x_itemsize <= (_VMEM_BUDGET // 4) and K <= 8192:
        TK = K
    else:
        TK = K  # fallback: monolithic (only if K has no 128-divisor)
        for cand in (4096, 2048, 1024, 512, 256, 128):
            if K % cand == 0:
                TK = cand
                break
    nk = pl.cdiv(K, TK)

    # --- batch tile from the remaining budget -------------------------------
    # double-buffered x + weight(+bias) blocks, double-buffered out, acc scratch
    weight_bytes = 2 * TK * N_pad * x_itemsize + 2 * N_pad * 4
    per_row = 2 * TK * x_itemsize + 2 * N_pad * 4 + N_pad * 4
    tb_cap = max(8, (_VMEM_BUDGET - weight_bytes) // per_row)
    TB = min(1024, tb_cap)

    # Keep >=4 grid steps on the batch axis when B allows it (v7x megacore
    # sharding + DMA/compute overlap); harmless on v5e/v6e.
    if B > 32:
        TB = min(TB, ((pl.cdiv(B, 4) + 7) // 8) * 8)
    TB = max(8, (TB // 8) * 8)
    if TB >= B:
        TB = B  # single full batch block (block dim == array dim is legal)
    nb = pl.cdiv(B, TB)
    return TB, nb, TK, nk


# ----------------------------------------------------------------------------
# Forward
# ----------------------------------------------------------------------------
def projection_forward(inp_nclw, w_big, b_pad, num_classes):
    """inp_nclw: (B, C, L, W) PyTorch layout; (w_big, b_pad) from
    precompute_projection_params.  Returns (B, num_classes) f32 log-probs."""
    B = inp_nclw.shape[0]
    K, N_pad = w_big.shape

    # Free contiguous reshape of the input: no HBM transpose / pad / cast pass.
    x = inp_nclw.reshape(B, K)
    if w_big.dtype != x.dtype:
        w_big = w_big.astype(x.dtype)  # tiny vs. the x stream

    TB, nb, TK, nk = _choose_tiles(B, K, N_pad, jnp.dtype(x.dtype).itemsize)

    out = pl.pallas_call(
        _projection_kernel,
        out_shape=jax.ShapeDtypeStruct((B, N_pad), jnp.float32),
        grid=(nb, nk),
        in_specs=[
            pl.BlockSpec((TB, TK), lambda i, k: (i, k)),
            pl.BlockSpec((TK, N_pad), lambda i, k: (k, 0)),
            pl.BlockSpec((1, N_pad), lambda i, k: (0, 0)),
        ],
        out_specs=pl.BlockSpec((TB, N_pad), lambda i, k: (i, 0)),
        scratch_shapes=[pltpu.VMEM((TB, N_pad), jnp.float32)],
        compiler_params=pltpu.CompilerParams(
            dimension_semantics=("parallel", "arbitrary")),
    )(x, w_big, b_pad)

    return out[:, :num_classes]


def projection_reference(inp_nclw, weight, bias):
    """Pure-JAX reference matching the PyTorch forward."""
    B = inp_nclw.shape[0]
    pooled = jnp.mean(inp_nclw, axis=2).reshape(B, -1)   # (B, C*W)
    logits = pooled @ weight.T + bias                    # (B, N)
    return jax.nn.log_softmax(logits, axis=1)


if __name__ == "__main__":
    # Module hyper-params (small, consistent with the forward pass):
    width = 32
    n_channels = 4
    num_classes = 10
    B, L = 2, 8                       # batch, sequence length (reduced dim)

    key = jax.random.PRNGKey(0)
    k_x, k_w, k_b = jax.random.split(key, 3)

    # deterministic synthetic nn.Linear(width*n_channels, num_classes) params
    fan_in = width * n_channels
    bound = 1.0 / jnp.sqrt(fan_in)
    weight = jax.random.uniform(k_w, (num_classes, fan_in),
                                minval=-bound, maxval=bound, dtype=jnp.float32)
    bias = jax.random.uniform(k_b, (num_classes,),
                              minval=-bound, maxval=bound, dtype=jnp.float32)

    # input in PyTorch layout: (B, n_channels, L, width)
    x = jax.random.normal(k_x, (B, n_channels, L, width), dtype=jnp.float32)

    # One-time (amortized) parameter re-layout, then the per-call kernel.
    w_big, b_pad = precompute_projection_params(weight, bias, n_channels, L)
    w_big, b_pad = jax.block_until_ready((w_big, b_pad))

    out = projection_forward(x, w_big, b_pad, num_classes)
    out = jax.block_until_ready(out)

    ref = projection_reference(x, weight, bias)
    assert out.shape == (B, num_classes)
    assert jnp.allclose(out, ref, atol=1e-4, rtol=1e-4), "mismatch vs reference"

    print("KERNEL_OK")
</pallas_src>

<mosaic_0001>
module attributes {stable_mosaic.version = 11 : i64} {
  func.func @_projection_kernel(%arg0: i32, %arg1: i32, %arg2: memref<2x1024xf32, #tpu.memory_space<vmem>>, %arg3: memref<1024x128xf32, #tpu.memory_space<vmem>>, %arg4: memref<1x128xf32, #tpu.memory_space<vmem>>, %arg5: memref<2x128xf32, #tpu.memory_space<vmem>>, %arg6: memref<2x128xf32, #tpu.memory_space<vmem>>) attributes {dimension_semantics = [#tpu.dimension_semantics<parallel>, #tpu.dimension_semantics<arbitrary>], iteration_bounds = array<i64: 1, 1>, scalar_prefetch = 0 : i64, scratch_operands = 1 : i64, tpu.core_type = #tpu.core_type<tc>, window_params = [{transform_indices = @transform_0, window_bounds = array<i64: 2, 1024>}, {transform_indices = @transform_1, window_bounds = array<i64: 1024, 128>}, {pipeline_mode = #tpu.pipeline_mode<synchronous>, transform_indices = @transform_2, window_bounds = array<i64: 1, 128>}, {transform_indices = @transform_3, window_bounds = array<i64: 2, 128>}]} {
    %c0_i32 = arith.constant 0 : i32
    %0 = arith.cmpi eq, %arg1, %c0_i32 : i32
    %1 = arith.extui %0 : i1 to i32
    %c0_i32_0 = arith.constant 0 : i32
    %2 = arith.cmpi ne, %1, %c0_i32_0 : i32
    scf.if %2 {
      %cst_10 = arith.constant 0.000000e+00 : f32
      %12 = vector.broadcast %cst_10 : f32 to vector<2x128xf32>
      %c0_11 = arith.constant 0 : index
      %c0_12 = arith.constant 0 : index
      %13 = vector.load %arg6[%c0_11, %c0_12] : memref<2x128xf32, #tpu.memory_space<vmem>>, vector<2x128xf32>
      tpu.vector_store %arg6[%c0_11, %c0_12], %12 {strides = array<i32>} : memref<2x128xf32, #tpu.memory_space<vmem>>, vector<2x128xf32>,
    } else {
    }
    %c0 = arith.constant 0 : index
    %c0_1 = arith.constant 0 : index
    %3 = vector.load %arg6[%c0, %c0_1] : memref<2x128xf32, #tpu.memory_space<vmem>>, vector<2x128xf32>
    %c0_2 = arith.constant 0 : index
    %c0_3 = arith.constant 0 : index
    %4 = vector.load %arg2[%c0_2, %c0_3] : memref<2x1024xf32, #tpu.memory_space<vmem>>, vector<2x1024xf32>
    %c0_4 = arith.constant 0 : index
    %c0_5 = arith.constant 0 : index
    %5 = vector.load %arg3[%c0_4, %c0_5] : memref<1024x128xf32, #tpu.memory_space<vmem>>, vector<1024x128xf32>
    %cst = arith.constant dense<0.000000e+00> : vector<2x128xf32>
    %6 = tpu.matmul %4, %5, %cst {dimension_numbers = #tpu.dot_dimension_numbers<[1], [0], [0], [1], [0, 0, 1, 1], [], []>} : vector<2x1024xf32>, vector<1024x128xf32>, vector<2x128xf32> -> vector<2x128xf32>
    %7 = arith.addf %3, %6 : vector<2x128xf32>
    %c0_6 = arith.constant 0 : index
    %c0_7 = arith.constant 0 : index
    %8 = vector.load %arg6[%c0_6, %c0_7] : memref<2x128xf32, #tpu.memory_space<vmem>>, vector<2x128xf32>
    tpu.vector_store %arg6[%c0_6, %c0_7], %7 {strides = array<i32>} : memref<2x128xf32, #tpu.memory_space<vmem>>, vector<2x128xf32>,
    %c0_i32_8 = arith.constant 0 : i32
    %9 = arith.cmpi eq, %arg1, %c0_i32_8 : i32
    %10 = arith.extui %9 : i1 to i32
    %c0_i32_9 = arith.constant 0 : i32
    %11 = arith.cmpi ne, %10, %c0_i32_9 : i32
    scf.if %11 {
      %c0_10 = arith.constant 0 : index
      %c0_11 = arith.constant 0 : index
      %12 = vector.load %arg6[%c0_10, %c0_11] : memref<2x128xf32, #tpu.memory_space<vmem>>, vector<2x128xf32>
      %c0_12 = arith.constant 0 : index
      %c0_13 = arith.constant 0 : index
      %13 = vector.load %arg4[%c0_12, %c0_13] : memref<1x128xf32, #tpu.memory_space<vmem>>, vector<1x128xf32>
      %14 = vector.broadcast %13 : vector<1x128xf32> to vector<2x128xf32>
      %15 = arith.addf %12, %14 : vector<2x128xf32>
      %cst_14 = arith.constant dense<0xFF800000> : vector<2xf32>
      %16 = vector.multi_reduction <maximumf>, %15, %cst_14 [1] : vector<2x128xf32> to vector<2xf32>
      %17 = vector.shape_cast %16 : vector<2xf32> to vector<2x1xf32>
      %18 = vector.broadcast %17 : vector<2x1xf32> to vector<2x128xf32>
      %19 = arith.subf %15, %18 : vector<2x128xf32>
      %20 = math.exp %19 : vector<2x128xf32>
      %cst_15 = arith.constant dense<0.000000e+00> : vector<2xf32>
      %21 = vector.multi_reduction <add>, %20, %cst_15 [1] : vector<2x128xf32> to vector<2xf32>
      %22 = vector.shape_cast %21 : vector<2xf32> to vector<2x1xf32>
      %23 = math.log %22 : vector<2x1xf32>
      %24 = vector.broadcast %23 : vector<2x1xf32> to vector<2x128xf32>
      %25 = arith.subf %19, %24 : vector<2x128xf32>
      %c0_16 = arith.constant 0 : index
      %c0_17 = arith.constant 0 : index
      %26 = vector.load %arg5[%c0_16, %c0_17] : memref<2x128xf32, #tpu.memory_space<vmem>>, vector<2x128xf32>
      tpu.vector_store %arg5[%c0_16, %c0_17], %25 {strides = array<i32>} : memref<2x128xf32, #tpu.memory_space<vmem>>, vector<2x128xf32>,
    } else {
    }
    return
  }
  func.func @transform_0(%arg0: i32, %arg1: i32) -> (i32, i32) {
    %c0_i32 = arith.constant 0 : i32
    return %arg0, %arg1 : i32, i32
  }
  func.func @transform_1(%arg0: i32, %arg1: i32) -> (i32, i32) {
    %c0_i32 = arith.constant 0 : i32
    %c0_i32_0 = arith.constant 0 : i32
    return %arg1, %c0_i32 : i32, i32
  }
  func.func @transform_2(%arg0: i32, %arg1: i32) -> (i32, i32) {
    %c0_i32 = arith.constant 0 : i32
    %c0_i32_0 = arith.constant 0 : i32
    %c0_i32_1 = arith.constant 0 : i32
    return %c0_i32, %c0_i32_0 : i32, i32
  }
  func.func @transform_3(%arg0: i32, %arg1: i32) -> (i32, i32) {
    %c0_i32 = arith.constant 0 : i32
    %c0_i32_0 = arith.constant 0 : i32
    return %arg0, %c0_i32 : i32, i32
  }
}

</mosaic_0001>

<bundles_post_ra>
// kernel: tpu_custom_call.1
= control target key start
LH: loop header
LB: loop body
LE: loop exit
PB: predicated region body
PF: predicated region fallthrough
CT: control target
= control target key end

     0   :  { %8 = vsyncpa [#allocation4], 0  ;;  %s810_s0 = inlined_call_operand.hbm [shape: f32[2,1024], index: 0, kind: input, shape index: {}]   ;;  %s811_s1 = inlined_call_operand.hbm [shape: f32[1024,128], index: 1, kind: input, shape index: {}]   ;;  %s812_s2 = inlined_call_operand.vmem [shape: f32[1,128], index: 2, kind: input, shape index: {}]   ;;  %s813_s3 = inlined_call_operand.hbm [shape: f32[2,128], index: 3, kind: output, shape index: {}]  }
   0x1   :  { %9 = vsyncpa [#allocation7], 0 }
   0x2   :  { %10 = vsyncpa [#allocation5], 0  ;;  %s765_s12 = smov [#allocation3]   ;;  %s766_s14 = smov [#allocation6]  }
   0x3   :  { %s17_s13 = sshll.u32 %s765_s12, 4  ;;  %s26_s15 = sshll.u32 %s766_s14, 4  ;;  %s18_s13 = int_to_ptr.vmem [resolvable:$true] %s17_s13  ;;  %s27_s15 = int_to_ptr.vmem [resolvable:$true] %s26_s15 }
   0x4   :  { %s707_s16 = scalar_lea.vmem %s18_s13, 256  ;;  %p712_p1 = scmp.lt.s32.totalorder %s18_s13, %s18_s13 }
   0x5   :  { %p708_p0 = scmp.ne.s32.totalorder %s18_s13, %s707_s16  ;;  %p713_p2 = scmp.lt.s32.totalorder %s707_s16, %s707_s16 }
   0x7   :  { %p714_p3 = por %p713_p2, %p712_p1 }
   0x9   :  { %p715_p4 = pnand %p714_p3, %p708_p0 }
   0xb   :  { %718 = shalt.err (!%p715_p4)
}
   0xc   :  { %20 = dma.hbm_to_vmem [thread:$0]  %s810_s0, 256, %s18_s13, [#allocation4]  }
   0xd   :  { %s727_s19 = scalar_lea.vmem %s27_s15, 16384  ;;  %p732_p6 = scmp.lt.s32.totalorder %s27_s15, %s27_s15 }
   0xe   :  { %p728_p5 = scmp.ne.s32.totalorder %s27_s15, %s727_s19  ;;  %p733_p7 = scmp.lt.s32.totalorder %s727_s19, %s727_s19 }
  0x10   :  { %p734_p8 = por %p733_p7, %p732_p6 }
  0x12   :  { %p735_p9 = pnand %p734_p8, %p728_p5 }
  0x14   :  { %738 = shalt.err (!%p735_p9)
}
  0x15   :  { %s767_s20 = smov 128   ;;  %s768_s21 = smov 8  }
  0x16   :  { %32 = dma.hbm_to_vmem [thread:$0]  %s811_s1, 16384, %s27_s15, [#allocation7], %s767_s20, %s767_s20, %s768_s21  }
  0x17   :  { %759 = dma.done.wait [#allocation4], 256  }
  0x18   :  { %760 = vsyncadd [#allocation4], 4294967040 }
  0x19   :  { %761 = dma.done.wait [#allocation7], 16384  }
  0x1a   :  { %762 = vsyncadd [#allocation7], 4294950912  ;;  %v80_v0 = vld [vmem:[#allocation6 + $0xf8] sm:$0xff]  ;;  %v79_v4 = vld [vmem:[#allocation6 + $0xf0] sm:$0xff]  ;;  %v769_v30 = vmov 1983009808   ;;  %v183_v32 = vlaneseq }
  0x1b   :  { %v112_v1 = vld [vmem:[#allocation6 + $0x1f8] sm:$0xff]  ;;  %546 = vmatprep.subr.mxu0 %v80_v0  ;;  %v111_v5 = vld [vmem:[#allocation6 + $0x1f0] sm:$0xff]  ;;  %v78_v8 = vld [vmem:[#allocation6 + $0xe8] sm:$0xff]  ;;  %v181_v31 = vunpack.c.l.s4 %v769_v30  ;;  %vm515_vm0 = vcmask 1041408   ;;  %s771_s24 = smov [#allocation8]  }
  0x1c   :  { %v64_v2 = vld [vmem:[#allocation6 + $0x78] sm:$0xff]  ;;  %581 = vmatprep.subr.mxu1 %v112_v1  ;;  %v63_v6 = vld [vmem:[#allocation6 + $0x70] sm:$0xff]  ;;  %v110_v9 = vld [vmem:[#allocation6 + $0x1e8] sm:$0xff]  ;;  %v184_v42 = vshrl.u32 %v183_v32, 7  ;;  %s535_s25 = sshll.u32 %s771_s24, 4  ;;  %s536_s25 = int_to_ptr.vmem [resolvable:$true] %s535_s25 }
  0x1d   :  { %v96_v3 = vld [vmem:[#allocation6 + $0x178] sm:$0xff]  ;;  %547 = vmatpush3.msra.mxu0 %v64_v2  ;;  %v95_v7 = vld [vmem:[#allocation6 + $0x170] sm:$0xff]  ;;  %v62_v10 = vld [vmem:[#allocation6 + $0x68] sm:$0xff]  ;;  %v182_v41 = vunpack.c.0.s8 %v181_v31  ;;  %p744_p11 = scmp.lt.s32.totalorder %s536_s25, %s536_s25 }
  0x1e   :  { %582 = vmatpush3.msra.mxu1 %v96_v3  ;;  %548 = vmatprep.subr.mxu0 %v79_v4  ;;  %v94_v11 = vld [vmem:[#allocation6 + $0x168] sm:$0xff]  ;;  %v77_v12 = vld [vmem:[#allocation6 + $0xe0] sm:$0xff]  ;;  %v76_v16 = vld [vmem:[#allocation6 + $0xd8] sm:$0xff] }
  0x1f   :  { %583 = vmatprep.subr.mxu1 %v111_v5  ;;  %549 = vmatpush3.msra.mxu0 %v63_v6  ;;  %v109_v13 = vld [vmem:[#allocation6 + $0x1e0] sm:$0xff]  ;;  %v108_v17 = vld [vmem:[#allocation6 + $0x1d8] sm:$0xff]  ;;  %v75_v20 = vld [vmem:[#allocation6 + $0xd0] sm:$0xff]  ;;  %v798_v51 = vsub.s32 %v182_v41, %v184_v42 }
  0x20   :  { %584 = vmatpush3.msra.mxu1 %v95_v7  ;;  %550 = vmatprep.subr.mxu0 %v78_v8  ;;  %v61_v14 = vld [vmem:[#allocation6 + $0x60] sm:$0xff]  ;;  %v60_v18 = vld [vmem:[#allocation6 + $0x58] sm:$0xff]  ;;  %v107_v21 = vld [vmem:[#allocation6 + $0x1d0] sm:$0xff] }
  0x21   :  { %585 = vmatprep.subr.mxu1 %v110_v9  ;;  %v93_v15 = vld [vmem:[#allocation6 + $0x160] sm:$0xff]  ;;  %551 = vmatpush3.msra.mxu0 %v62_v10  ;;  %v92_v19 = vld [vmem:[#allocation6 + $0x158] sm:$0xff]  ;;  %v59_v22 = vld [vmem:[#allocation6 + $0x50] sm:$0xff] }
  0x22   :  { %586 = vmatpush3.msra.mxu1 %v94_v11  ;;  %552 = vmatprep.subr.mxu0 %v77_v12  ;;  %v91_v23 = vld [vmem:[#allocation6 + $0x150] sm:$0xff]  ;;  %v74_v24 = vld [vmem:[#allocation6 + $0xc8] sm:$0xff]  ;;  %v73_v28 = vld [vmem:[#allocation6 + $0xc0] sm:$0xff] }
  0x23   :  { %587 = vmatprep.subr.mxu1 %v109_v13  ;;  %553 = vmatpush3.msra.mxu0 %v61_v14  ;;  %v106_v25 = vld [vmem:[#allocation6 + $0x1c8] sm:$0xff]  ;;  %v105_v29 = vld [vmem:[#allocation6 + $0x1c0] sm:$0xff]  ;;  %v72_v35 = vld [vmem:[#allocation6 + $0xb8] sm:$0xff] }
  0x24   :  { %588 = vmatpush3.msra.mxu1 %v93_v15  ;;  %554 = vmatprep.subr.mxu0 %v76_v16  ;;  %v58_v26 = vld [vmem:[#allocation6 + $0x48] sm:$0xff]  ;;  %v57_v33 = vld [vmem:[#allocation6 + $0x40] sm:$0xff]  ;;  %v104_v36 = vld [vmem:[#allocation6 + $0x1b8] sm:$0xff] }
  0x25   :  { %589 = vmatprep.subr.mxu1 %v108_v17  ;;  %555 = vmatpush3.msra.mxu0 %v60_v18  ;;  %v90_v27 = vld [vmem:[#allocation6 + $0x148] sm:$0xff]  ;;  %v89_v34 = vld [vmem:[#allocation6 + $0x140] sm:$0xff]  ;;  %v56_v37 = vld [vmem:[#allocation6 + $0x38] sm:$0xff] }
  0x26   :  { %590 = vmatpush3.msra.mxu1 %v92_v19  ;;  %556 = vmatprep.subr.mxu0 %v75_v20  ;;  %v88_v38 = vld [vmem:[#allocation6 + $0x138] sm:$0xff]  ;;  %v71_v39 = vld [vmem:[#allocation6 + $0xb0] sm:$0xff]  ;;  %v70_v45 = vld [vmem:[#allocation6 + $0xa8] sm:$0xff] }
  0x27   :  { %591 = vmatprep.subr.mxu1 %v107_v21  ;;  %557 = vmatpush3.msra.mxu0 %v59_v22  ;;  %v103_v40 = vld [vmem:[#allocation6 + $0x1b0] sm:$0xff]  ;;  %v102_v46 = vld [vmem:[#allocation6 + $0x1a8] sm:$0xff]  ;;  %v69_v49 = vld [vmem:[#allocation6 + $0xa0] sm:$0xff] }
  0x28   :  { %592 = vmatpush3.msra.mxu1 %v91_v23  ;;  %558 = vmatprep.subr.mxu0 %v74_v24  ;;  %v55_v43 = vld [vmem:[#allocation6 + $0x30] sm:$0xff]  ;;  %v54_v47 = vld [vmem:[#allocation6 + $0x28] sm:$0xff]  ;;  %v101_v50 = vld [vmem:[#allocation6 + $0x1a0] sm:$0xff] }
  0x29   :  { %593 = vmatprep.subr.mxu1 %v106_v25  ;;  %559 = vmatpush3.msra.mxu0 %v58_v26  ;;  %v87_v44 = vld [vmem:[#allocation6 + $0x130] sm:$0xff]  ;;  %v86_v48 = vld [vmem:[#allocation6 + $0x128] sm:$0xff]  ;;  %v53_v52 = vld [vmem:[#allocation6 + $0x20] sm:$0xff] }
  0x2a   :  { %594 = vmatpush3.msra.mxu1 %v90_v27  ;;  %560 = vmatprep.subr.mxu0 %v73_v28  ;;  %v85_v53 = vld [vmem:[#allocation6 + $0x120] sm:$0xff]  ;;  %v47_v54 = vld [vmem:[#allocation3] sm:$0xff]  ;;  %v68_v55 = vld [vmem:[#allocation6 + $0x98] sm:$0xff] }
  0x2b   :  { %595 = vmatprep.subr.mxu1 %v105_v29  ;;  %561 = vmatpush3.msra.mxu0 %v57_v33  ;;  %v100_v56 = vld [vmem:[#allocation6 + $0x198] sm:$0xff]  ;;  %v179_v57 = vcombine.high %v47_v54, %v47_v54  ;;  %v67_v60 = vld [vmem:[#allocation6 + $0x90] sm:$0xff]  ;;  %v186_v62 = vrot.slane %v47_v54, %v798_v51  ;;  %v66_v2 = vld [vmem:[#allocation6 + $0x88] sm:$0xff] }
  0x2c   :  { %596 = vmatpush3.msra.mxu1 %v89_v34  ;;  %562 = vmatprep.subr.mxu0 %v72_v35  ;;  %v52_v58 = vld [vmem:[#allocation6 + $0x18] sm:$0xff]  ;;  %v99_v61 = vld [vmem:[#allocation6 + $0x190] sm:$0xff]  ;;  %v98_v3 = vld [vmem:[#allocation6 + $0x188] sm:$0xff] }
  0x2d   :  { %597 = vmatprep.subr.mxu1 %v104_v36  ;;  %563 = vmatpush3.msra.mxu0 %v56_v37  ;;  %v84_v59 = vld [vmem:[#allocation6 + $0x118] sm:$0xff]  ;;  %v51_v63 = vld [vmem:[#allocation6 + $0x10] sm:$0xff]  ;;  %v193_v1 = vrot.slane %v179_v57, %v798_v51  ;;  %v50_v4 = vld [vmem:[#allocation6 + $0x8] sm:$0xff]  ;;  %v194_v8 = vcombine.high %v186_v62, %v186_v62 }
  0x2e   :  { %598 = vmatpush3.msra.mxu1 %v88_v38  ;;  %564 = vmatprep.subr.mxu0 %v71_v39  ;;  %v83_v0 = vld [vmem:[#allocation6 + $0x110] sm:$0xff]  ;;  %v82_v5 = vld [vmem:[#allocation6 + $0x108] sm:$0xff]  ;;  %v65_v6 = vld [vmem:[#allocation6 + $0x80] sm:$0xff] }
  0x2f   :  { %599 = vmatprep.subr.mxu1 %v103_v40  ;;  %565 = vmatpush3.msra.mxu0 %v55_v43  ;;  %v97_v7 = vld [vmem:[#allocation6 + $0x180] sm:$0xff]  ;;  %v195_v10 = vcombine.high %v193_v1, %v193_v1  ;;  %v144_v12 = vld [vmem:[#allocation6 + $0x2f8] sm:$0xff]  ;;  %v143_v16 = vld [vmem:[#allocation6 + $0x2f0] sm:$0xff] }
  0x30   :  { %600 = vmatpush3.msra.mxu1 %v87_v44  ;;  %566 = vmatprep.subr.mxu0 %v70_v45  ;;  %v49_v9 = vld [vmem:[#allocation6] sm:$0xff]  ;;  %v176_v13 = vld [vmem:[#allocation6 + $0x3f8] sm:$0xff]  ;;  %v175_v17 = vld [vmem:[#allocation6 + $0x3f0] sm:$0xff] }
  0x31   :  { %601 = vmatprep.subr.mxu1 %v102_v46  ;;  %567 = vmatpush3.msra.mxu0 %v54_v47  ;;  %v81_v11 = vld [vmem:[#allocation6 + $0x100] sm:$0xff]  ;;  %v128_v14 = vld [vmem:[#allocation6 + $0x278] sm:$0xff]  ;;  %v127_v18 = vld [vmem:[#allocation6 + $0x270] sm:$0xff] }
  0x32   :  { %602 = vmatpush3.msra.mxu1 %v86_v48  ;;  %568 = vmatprep.subr.mxu0 %v69_v49  ;;  %v160_v15 = vld [vmem:[#allocation6 + $0x378] sm:$0xff]  ;;  %v159_v19 = vld [vmem:[#allocation6 + $0x370] sm:$0xff]  ;;  %v142_v20 = vld [vmem:[#allocation6 + $0x2e8] sm:$0xff] }
  0x33   :  { %603 = vmatprep.subr.mxu1 %v101_v50  ;;  %569 = vmatpush3.msra.mxu0 %v53_v52  ;;  %v174_v21 = vld [vmem:[#allocation6 + $0x3e8] sm:$0xff]  ;;  %v141_v24 = vld [vmem:[#allocation6 + $0x2e0] sm:$0xff]  ;;  %v140_v28 = vld [vmem:[#allocation6 + $0x2d8] sm:$0xff] }
  0x34   :  { %604 = vmatpush3.msra.mxu1 %v85_v53  ;;  %570 = vmatprep.subr.mxu0 %v68_v55  ;;  %v126_v22 = vld [vmem:[#allocation6 + $0x268] sm:$0xff]  ;;  %v173_v25 = vld [vmem:[#allocation6 + $0x3e0] sm:$0xff]  ;;  %v172_v29 = vld [vmem:[#allocation6 + $0x3d8] sm:$0xff] }
  0x35   :  { %605 = vmatprep.subr.mxu1 %v100_v56  ;;  %571 = vmatpush3.msra.mxu0 %v52_v58  ;;  %v158_v23 = vld [vmem:[#allocation6 + $0x368] sm:$0xff]  ;;  %v125_v26 = vld [vmem:[#allocation6 + $0x260] sm:$0xff]  ;;  %v124_v30 = vld [vmem:[#allocation6 + $0x258] sm:$0xff] }
  0x36   :  { %606 = vmatpush3.msra.mxu1 %v84_v59  ;;  %572 = vmatprep.subr.mxu0 %v67_v60  ;;  %v157_v27 = vld [vmem:[#allocation6 + $0x360] sm:$0xff]  ;;  %v156_v31 = vld [vmem:[#allocation6 + $0x358] sm:$0xff]  ;;  %v139_v32 = vld [vmem:[#allocation6 + $0x2d0] sm:$0xff] }
  0x37   :  { %607 = vmatprep.subr.mxu1 %v99_v61  ;;  %573 = vmatpush3.msra.mxu0 %v51_v63  ;;  %v171_v33 = vld [vmem:[#allocation6 + $0x3d0] sm:$0xff]  ;;  %v138_v36 = vld [vmem:[#allocation6 + $0x2c8] sm:$0xff]  ;;  %v137_v40 = vld [vmem:[#allocation6 + $0x2c0] sm:$0xff] }
  0x38   :  { %608 = vmatpush3.msra.mxu1 %v83_v0  ;;  %574 = vmatprep.subr.mxu0 %v66_v2  ;;  %v123_v34 = vld [vmem:[#allocation6 + $0x250] sm:$0xff]  ;;  %v170_v37 = vld [vmem:[#allocation6 + $0x3c8] sm:$0xff]  ;;  %v169_v41 = vld [vmem:[#allocation6 + $0x3c0] sm:$0xff] }
  0x39   :  { %609 = vmatprep.subr.mxu1 %v98_v3  ;;  %575 = vmatpush3.msra.mxu0 %v50_v4  ;;  %v155_v35 = vld [vmem:[#allocation6 + $0x350] sm:$0xff]  ;;  %v122_v38 = vld [vmem:[#allocation6 + $0x248] sm:$0xff]  ;;  %v121_v42 = vld [vmem:[#allocation6 + $0x240] sm:$0xff] }
  0x3a   :  { %610 = vmatpush3.msra.mxu1 %v82_v5  ;;  %576 = vmatprep.subr.mxu0 %v65_v6  ;;  %v154_v39 = vld [vmem:[#allocation6 + $0x348] sm:$0xff]  ;;  %v153_v43 = vld [vmem:[#allocation6 + $0x340] sm:$0xff]  ;;  %v136_v44 = vld [vmem:[#allocation6 + $0x2b8] sm:$0xff] }
  0x3b   :  { %611 = vmatprep.subr.mxu1 %v97_v7  ;;  %577 = vmatpush3.msra.mxu0 %v49_v9  ;;  %v168_v45 = vld [vmem:[#allocation6 + $0x3b8] sm:$0xff]  ;;  %v135_v48 = vld [vmem:[#allocation6 + $0x2b0] sm:$0xff]  ;;  %v134_v53 = vld [vmem:[#allocation6 + $0x2a8] sm:$0xff] }
  0x3c   :  { %285 = vmatprep.mubr.f32.mxu0 %v194_v8  ;;  %612 = vmatpush3.msra.mxu1 %v81_v11  ;;  %v120_v46 = vld [vmem:[#allocation6 + $0x238] sm:$0xff]  ;;  %v167_v49 = vld [vmem:[#allocation6 + $0x3b0] sm:$0xff]  ;;  %v166_v54 = vld [vmem:[#allocation6 + $0x3a8] sm:$0xff] }
  0x3d   :  { %355 = vmatprep.mubr.f32.mxu1 %v195_v10  ;;  %286 = vmatmul.mubr.f32.vlgmr.msra.gmra.mxu0 %v186_v62  ;;  %v152_v47 = vld [vmem:[#allocation6 + $0x338] sm:$0xff]  ;;  %v119_v50 = vld [vmem:[#allocation6 + $0x230] sm:$0xff]  ;;  %v118_v56 = vld [vmem:[#allocation6 + $0x228] sm:$0xff] }
  0x3e   :  { %356 = vmatmul.mubr.f32.vlgmr.msra.gmra.mxu1 %v193_v1  ;;  %616 = vmatprep.subr.mxu0 %v144_v12  ;;  %v151_v52 = vld [vmem:[#allocation6 + $0x330] sm:$0xff]  ;;  %v48_v55 = vld [vmem:[#allocation3 + $0x8] sm:$0xff]  ;;  %v150_v57 = vld [vmem:[#allocation6 + $0x328] sm:$0xff] }
  0x3f   :  { %651 = vmatprep.subr.mxu1 %v176_v13  ;;  %617 = vmatpush3.msra.mxu0 %v128_v14  ;;  %v133_v58 = vld [vmem:[#allocation6 + $0x2a0] sm:$0xff]  ;;  %v196_v62 = vcombine.high %v48_v55, %v48_v55  ;;  %v132_v63 = vld [vmem:[#allocation6 + $0x298] sm:$0xff]  ;;  %v131_v3 = vld [vmem:[#allocation6 + $0x290] sm:$0xff]  ;;  %v203_v5 = vrot.slane %v48_v55, %v798_v51 }
  0x40   :  { %652 = vmatpush3.msra.mxu1 %v160_v15  ;;  %618 = vmatprep.subr.mxu0 %v143_v16  ;;  %v165_v59 = vld [vmem:[#allocation6 + $0x3a0] sm:$0xff]  ;;  %v164_v0 = vld [vmem:[#allocation6 + $0x398] sm:$0xff]  ;;  %v163_v4 = vld [vmem:[#allocation6 + $0x390] sm:$0xff] }
  0x41   :  { %653 = vmatprep.subr.mxu1 %v175_v17  ;;  %619 = vmatpush3.msra.mxu0 %v127_v18  ;;  %v117_v60 = vld [vmem:[#allocation6 + $0x220] sm:$0xff]  ;;  %v116_v1 = vld [vmem:[#allocation6 + $0x218] sm:$0xff]  ;;  %v115_v6 = vld [vmem:[#allocation6 + $0x210] sm:$0xff]  ;;  %v210_v8 = vrot.slane %v196_v62, %v798_v51  ;;  %v211_v15 = vcombine.high %v203_v5, %v203_v5  ;;  %v770_v18 = vmov 0.0  }
  0x42   :  { %654 = vmatpush3.msra.mxu1 %v159_v19  ;;  %620 = vmatprep.subr.mxu0 %v142_v20  ;;  %v149_v61 = vld [vmem:[#allocation6 + $0x320] sm:$0xff]  ;;  %v148_v2 = vld [vmem:[#allocation6 + $0x318] sm:$0xff]  ;;  %v147_v7 = vld [vmem:[#allocation6 + $0x310] sm:$0xff]  ;;  %45 = vst [vmem:[#allocation2] sm:$0x3] %v770_v18 }
  0x43   :  { %655 = vmatprep.subr.mxu1 %v174_v21  ;;  %621 = vmatpush3.msra.mxu0 %v126_v22  ;;  %v130_v9 = vld [vmem:[#allocation6 + $0x288] sm:$0xff]  ;;  %v129_v13 = vld [vmem:[#allocation6 + $0x280] sm:$0xff]  ;;  %v212_v17 = vcombine.high %v210_v8, %v210_v8 }
  0x44   :  { %656 = vmatpush3.msra.mxu1 %v158_v23  ;;  %622 = vmatprep.subr.mxu0 %v141_v24  ;;  %v162_v10 = vld [vmem:[#allocation6 + $0x388] sm:$0xff]  ;;  %v161_v14 = vld [vmem:[#allocation6 + $0x380] sm:$0xff] }
  0x45   :  { %657 = vmatprep.subr.mxu1 %v173_v25  ;;  %623 = vmatpush3.msra.mxu0 %v125_v26  ;;  %v114_v11 = vld [vmem:[#allocation6 + $0x208] sm:$0xff]  ;;  %v113_v16 = vld [vmem:[#allocation6 + $0x200] sm:$0xff] }
  0x46   :  { %658 = vmatpush3.msra.mxu1 %v157_v27  ;;  %624 = vmatprep.subr.mxu0 %v140_v28  ;;  %v146_v12 = vld [vmem:[#allocation6 + $0x308] sm:$0xff]  ;;  %v145_v51 = vld [vmem:[#allocation6 + $0x300] sm:$0xff] }
  0x47   :  { %659 = vmatprep.subr.mxu1 %v172_v29  ;;  %625 = vmatpush3.msra.mxu0 %v124_v30 }
  0x48   :  { %660 = vmatpush3.msra.mxu1 %v156_v31  ;;  %626 = vmatprep.subr.mxu0 %v139_v32 }
  0x49   :  { %661 = vmatprep.subr.mxu1 %v171_v33  ;;  %627 = vmatpush3.msra.mxu0 %v123_v34  ;;  %v46_v33 = vld [vmem:[#allocation2] sm:$0x3] }
  0x4a   :  { %662 = vmatpush3.msra.mxu1 %v155_v35  ;;  %628 = vmatprep.subr.mxu0 %v138_v36  ;;  %v545_v36 = vld [vmem:[%s812_s2] ss:$0 sm:$0xff]  ;;  %s739_s2 = scalar_lea.vmem %s536_s25, 32 }
  0x4b   :  { %663 = vmatprep.subr.mxu1 %v170_v37  ;;  %629 = vmatpush3.msra.mxu0 %v122_v38  ;;  %p740_p10 = scmp.ne.s32.totalorder %s536_s25, %s739_s2  ;;  %p745_p12 = scmp.lt.s32.totalorder %s739_s2, %s739_s2 }
  0x4c   :  { %664 = vmatpush3.msra.mxu1 %v154_v39  ;;  %630 = vmatprep.subr.mxu0 %v137_v40 }
  0x4d   :  { %665 = vmatprep.subr.mxu1 %v169_v41  ;;  %631 = vmatpush3.msra.mxu0 %v121_v42  ;;  %p746_p13 = por %p745_p12, %p744_p11 }
  0x4e   :  { %666 = vmatpush3.msra.mxu1 %v153_v43  ;;  %632 = vmatprep.subr.mxu0 %v136_v44 }
  0x4f   :  { %667 = vmatprep.subr.mxu1 %v168_v45  ;;  %633 = vmatpush3.msra.mxu0 %v120_v46  ;;  %p747_p0 = pnand %p746_p13, %p740_p10 }
  0x50   :  { %668 = vmatpush3.msra.mxu1 %v152_v47  ;;  %634 = vmatprep.subr.mxu0 %v135_v48 }
  0x51   :  { %669 = vmatprep.subr.mxu1 %v167_v49  ;;  %635 = vmatpush3.msra.mxu0 %v119_v50 }
  0x52   :  { %670 = vmatpush3.msra.mxu1 %v151_v52  ;;  %636 = vmatprep.subr.mxu0 %v134_v53 }
  0x53   :  { %671 = vmatprep.subr.mxu1 %v166_v54  ;;  %637 = vmatpush3.msra.mxu0 %v118_v56 }
  0x54   :  { %672 = vmatpush3.msra.mxu1 %v150_v57  ;;  %638 = vmatprep.subr.mxu0 %v133_v58 }
  0x55   :  { %673 = vmatprep.subr.mxu1 %v165_v59  ;;  %639 = vmatpush3.msra.mxu0 %v117_v60 }
  0x56   :  { %674 = vmatpush3.msra.mxu1 %v149_v61  ;;  %640 = vmatprep.subr.mxu0 %v132_v63 }
  0x57   :  { %675 = vmatprep.subr.mxu1 %v164_v0  ;;  %641 = vmatpush3.msra.mxu0 %v116_v1 }
  0x58   :  { %676 = vmatpush3.msra.mxu1 %v148_v2  ;;  %642 = vmatprep.subr.mxu0 %v131_v3 }
  0x59   :  { %677 = vmatprep.subr.mxu1 %v163_v4  ;;  %643 = vmatpush3.msra.mxu0 %v115_v6 }
  0x5a   :  { %678 = vmatpush3.msra.mxu1 %v147_v7  ;;  %644 = vmatprep.subr.mxu0 %v130_v9 }
  0x5b   :  { %679 = vmatprep.subr.mxu1 %v162_v10  ;;  %645 = vmatpush3.msra.mxu0 %v114_v11 }
  0x5c   :  { %680 = vmatpush3.msra.mxu1 %v146_v12  ;;  %646 = vmatprep.subr.mxu0 %v129_v13 }
  0x5d   :  { %681 = vmatprep.subr.mxu1 %v161_v14  ;;  %647 = vmatpush3.msra.mxu0 %v113_v16 }
  0x5e   :  { %425 = vmatprep.mubr.f32.mxu0 %v211_v15  ;;  %682 = vmatpush3.msra.mxu1 %v145_v51 }
  0x5f   :  { %495 = vmatprep.mubr.f32.mxu1 %v212_v17  ;;  %426 = vmatmul.mubr.f32.vlgmr.msra.gmra.mxu0 %v203_v5 }
  0x60   :  { %496 = vmatmul.mubr.f32.vlgmr.msra.gmra.mxu1 %v210_v8 }
  0xfd   :  { %v578_v19 = vpop.f32.mrf.mxu0 }
  0xfe   :  { %v613_v20 = vpop.f32.mrf.mxu1 }
  0xff   :  { %v579_v21 = vpop.f32.mrf.mxu0 }
 0x100   :  { %v614_v22 = vpop.f32.mrf.mxu1  ;;  %v580_v23 = vadd.f32 %v579_v21, %v578_v19 }
 0x101   :  { %v615_v24 = vadd.f32 %v614_v22, %v613_v20 }
 0x103   :  { %v358_v29 = vadd.f32 %v615_v24, %v580_v23 }
 0x11f   :  { %v648_v25 = vpop.f32.mrf.mxu0 }
 0x120   :  { %v683_v26 = vpop.f32.mrf.mxu1 }
 0x121   :  { %v649_v27 = vpop.f32.mrf.mxu0 }
 0x122   :  { %v684_v28 = vpop.f32.mrf.mxu1  ;;  %v650_v30 = vadd.f32 %v649_v27, %v648_v25 }
 0x123   :  { %v685_v32 = vadd.f32 %v684_v28, %v683_v26 }
 0x124   :  { %v428_v31 = vadd.f32 %v650_v30, %v358_v29 }
 0x126   :  { %v498_v34 = vadd.f32 %v685_v32, %v428_v31 }
 0x128   :  { %v501_v35 = vadd.f32 %v498_v34, %v46_v33 }
 0x12a   :  { %502 = vst [vmem:[#allocation2] sm:$0x3] %v501_v35 }
 0x131   :  { %v506_v37 = vld [vmem:[#allocation2] sm:$0x3] }
 0x132   :  { %v514_v38 = vadd.f32 %v545_v36, %v506_v37 }
 0x134   :  { %v516_v39 = vsel %vm515_vm0, %v514_v38, -inf }
 0x135   :  { %517 = vmax.xlane.f32.xlu0 %v516_v39 }
 0x1be   :  { %v518_v40 = vpop.xlane.xlu0 %517 }
 0x1bf   :  { %v519_v41 = vsub.f32 %v514_v38, %v518_v40 }
 0x1c1   :  { %v520_v42 = vmul.f32 1.442695, %v519_v41 }
 0x1c3   :  { %695 = vpow2.f32 %v520_v42 }
 0x1d0   :  { %v696_v43 = vpop.eup %695 }
 0x1d1   :  { %v522_v44 = vsel %vm515_vm0, %v696_v43, 0.0 }
 0x1d2   :  { %523 = vadd.xlane.f32.xlu0 %v522_v44 }
 0x25b   :  { %v524_v45 = vpop.xlane.xlu0 %523 }
 0x25c   :  { %697 = vlog2.f32 %v524_v45 }
 0x269   :  { %v698_v46 = vpop.eup %697 }
 0x26a   :  { %v526_v47 = vmul.f32 0.6931472, %v698_v46 }
 0x26c   :  { %v527_v48 = vsub.f32 %v519_v41, %v526_v47 }
 0x26e   :  { %528 = vst [vmem:[#allocation8] sm:$0x3] %v527_v48 }
 0x26f   :  { %750 = shalt.err (!%p747_p0)
}
 0x270   :  { %538 = dma.vmem_to_hbm [thread:$0]  %s536_s25, 32, %s813_s3, [#allocation5]  }
 0x271   :  { %763 = dma.done.wait [#allocation5], 32  }
 0x272   :  { %764 = vsyncadd [#allocation5], 4294967264 }
 0x273   :  { %542 = vsyncpa [#allocation4], 1 }
 0x274   :  { %543 = vsyncpa [#allocation7], 1 }
 0x275   :  { %544 = vsyncpa [#allocation5], 1 }

</bundles_post_ra>
